<compile_context>
chip_gen: v7x
topology: tpu7x:2x2x1
jax: 0.10.0
libtpu: 0.0.40
codegen_flags: <defaults>
</compile_context>

<pallas_src>
import functools

import jax
import jax.numpy as jnp
from jax.experimental import pallas as pl
from jax.experimental.pallas import tpu as pltpu


def _round_up(x: int, m: int) -> int:
    return ((x + m - 1) // m) * m


def _fused_mlp_kernel(x_ref, *refs, num_layers: int):
    """Whole MLP in one kernel body.

    refs = (w0, b0, w1, b1, ..., w_{L-1}, b_{L-1}, o_ref).
    All tiles are VMEM-resident; intermediates never leave the chip.
    """
    o_ref = refs[-1]
    h = x_ref[...]
    for i in range(num_layers):
        w = refs[2 * i][...]
        b = refs[2 * i + 1][...]
        h = jnp.dot(h, w, preferred_element_type=jnp.float32) + b
        if i != num_layers - 1:
            # LeakyReLU(negative_slope=0.1), f32 VPU math.
            h = jnp.where(h > 0, h, 0.1 * h)
    o_ref[...] = h.astype(o_ref.dtype)


def mlp_forward(x, params, *, tm=None):
    """Fused MLP forward: one pallas_call, grid over the batch dim.

    x:       (B, in_size) f32
    params:  list of (W, b) with W: (in, out), b: (out,)
    """
    B, in_size = x.shape
    num_layers = len(params)
    out_size = params[-1][0].shape[1]

    # Lane-dense padded feature sizes (multiples of 128).
    feat_sizes = [in_size] + [w.shape[1] for (w, _) in params]
    feat_pad = [_round_up(s, 128) for s in feat_sizes]

    # Batch tile: 128 rows per grid step when batch is large, otherwise one
    # sublane-aligned tile covering the whole (padded) batch.
    if tm is None:
        tm = 128 if B >= 128 else _round_up(B, 8)
    b_pad = _round_up(B, tm)

    # --- zero-pad inputs (numerically exact, see header comment) ------------
    x_p = jnp.zeros((b_pad, feat_pad[0]), x.dtype).at[:B, :in_size].set(x)

    flat_inputs = [x_p]
    in_specs = [pl.BlockSpec((tm, feat_pad[0]), lambda i: (i, 0))]
    flops = 0
    bytes_accessed = x_p.size * 4
    for li, (w, b) in enumerate(params):
        fi, fo = w.shape
        fi_p, fo_p = feat_pad[li], feat_pad[li + 1]
        w_p = jnp.zeros((fi_p, fo_p), w.dtype).at[:fi, :fo].set(w)
        b_p = jnp.zeros((1, fo_p), b.dtype).at[0, :fo].set(b)
        flat_inputs += [w_p, b_p]
        # Weights/biases are small: full-extent blocks, reused each grid step.
        in_specs += [
            pl.BlockSpec((fi_p, fo_p), lambda i: (0, 0)),
            pl.BlockSpec((1, fo_p), lambda i: (0, 0)),
        ]
        flops += 2 * b_pad * fi_p * fo_p
        bytes_accessed += (w_p.size + b_p.size) * 4
    out_pad = feat_pad[-1]
    bytes_accessed += b_pad * out_pad * 4

    kernel = functools.partial(_fused_mlp_kernel, num_layers=num_layers)

    out_p = pl.pallas_call(
        kernel,
        out_shape=jax.ShapeDtypeStruct((b_pad, out_pad), x.dtype),
        grid=(b_pad // tm,),
        in_specs=in_specs,
        out_specs=pl.BlockSpec((tm, out_pad), lambda i: (i, 0)),
        compiler_params=pltpu.CompilerParams(
            dimension_semantics=("parallel",),   # shard batch across TCs (v7x)
            vmem_limit_bytes=64 * 1024 * 1024,
        ),
        cost_estimate=pl.CostEstimate(
            flops=flops, transcendentals=0, bytes_accessed=bytes_accessed),
    )(*flat_inputs)

    # Strip batch / feature padding.
    return out_p[:B, :out_size]


def init_mlp_params(key, in_size, hidden_sizes, out_size):
    """Deterministic parameter init (PyTorch-style uniform fan-in bound)."""
    sizes = [in_size] + list(hidden_sizes) + [out_size]
    params = []
    for i in range(len(sizes) - 1):
        fan_in, fan_out = sizes[i], sizes[i + 1]
        key, kw, kb = jax.random.split(key, 3)
        bound = 1.0 / jnp.sqrt(fan_in)
        # stored as (in, out) = transpose of PyTorch's (out, in)
        w = jax.random.uniform(kw, (fan_in, fan_out), jnp.float32, -bound, bound)
        b = jax.random.uniform(kb, (fan_out,), jnp.float32, -bound, bound)
        params.append((w, b))
    return params


def mlp_reference(x, params):
    """Plain-JAX reference for correctness checking."""
    n = len(params)
    for i, (w, b) in enumerate(params):
        x = x @ w + b
        if i != n - 1:
            x = jnp.where(x > 0, x, 0.1 * x)
    return x


if __name__ == "__main__":
    # Small shapes consistent with the module: Mlp(in_size=16, hidden=[32, 32], out=8)
    batch, in_size, hidden_sizes, out_size = 2, 16, [32, 32], 8

    key = jax.random.PRNGKey(0)
    key, kx = jax.random.split(key)
    x = jax.random.normal(kx, (batch, in_size), dtype=jnp.float32)

    params = init_mlp_params(key, in_size, hidden_sizes, out_size)

    out = mlp_forward(x, params)
    out = jax.block_until_ready(out)

    ref = mlp_reference(x, params)
    assert out.shape == (batch, out_size)
    assert jnp.allclose(out, ref, atol=1e-5, rtol=1e-5)

    print("KERNEL_OK")
</pallas_src>

<mosaic_0001>
module attributes {stable_mosaic.version = 11 : i64} {
  func.func @_fused_mlp_kernel(%arg0: i32, %arg1: memref<8x128xf32, #tpu.memory_space<vmem>>, %arg2: memref<128x128xf32, #tpu.memory_space<vmem>>, %arg3: memref<1x128xf32, #tpu.memory_space<vmem>>, %arg4: memref<128x128xf32, #tpu.memory_space<vmem>>, %arg5: memref<1x128xf32, #tpu.memory_space<vmem>>, %arg6: memref<128x128xf32, #tpu.memory_space<vmem>>, %arg7: memref<1x128xf32, #tpu.memory_space<vmem>>, %arg8: memref<8x128xf32, #tpu.memory_space<vmem>>) attributes {dimension_semantics = [#tpu.dimension_semantics<parallel>], iteration_bounds = array<i64: 1>, scalar_prefetch = 0 : i64, scratch_operands = 0 : i64, tpu.core_type = #tpu.core_type<tc>, window_params = [{transform_indices = @transform_0, window_bounds = array<i64: 8, 128>}, {pipeline_mode = #tpu.pipeline_mode<synchronous>, transform_indices = @transform_1, window_bounds = array<i64: 128, 128>}, {pipeline_mode = #tpu.pipeline_mode<synchronous>, transform_indices = @transform_2, window_bounds = array<i64: 1, 128>}, {pipeline_mode = #tpu.pipeline_mode<synchronous>, transform_indices = @transform_3, window_bounds = array<i64: 128, 128>}, {pipeline_mode = #tpu.pipeline_mode<synchronous>, transform_indices = @transform_4, window_bounds = array<i64: 1, 128>}, {pipeline_mode = #tpu.pipeline_mode<synchronous>, transform_indices = @transform_5, window_bounds = array<i64: 128, 128>}, {pipeline_mode = #tpu.pipeline_mode<synchronous>, transform_indices = @transform_6, window_bounds = array<i64: 1, 128>}, {transform_indices = @transform_7, window_bounds = array<i64: 8, 128>}]} {
    %c0 = arith.constant 0 : index
    %c0_0 = arith.constant 0 : index
    %0 = vector.load %arg1[%c0, %c0_0] : memref<8x128xf32, #tpu.memory_space<vmem>>, vector<8x128xf32>
    %c0_1 = arith.constant 0 : index
    %c0_2 = arith.constant 0 : index
    %1 = vector.load %arg2[%c0_1, %c0_2] : memref<128x128xf32, #tpu.memory_space<vmem>>, vector<128x128xf32>
    %c0_3 = arith.constant 0 : index
    %c0_4 = arith.constant 0 : index
    %2 = vector.load %arg3[%c0_3, %c0_4] : memref<1x128xf32, #tpu.memory_space<vmem>>, vector<1x128xf32>
    %cst = arith.constant dense<0.000000e+00> : vector<8x128xf32>
    %3 = tpu.matmul %0, %1, %cst {dimension_numbers = #tpu.dot_dimension_numbers<[1], [0], [0], [1], [0, 0, 1, 1], [], []>} : vector<8x128xf32>, vector<128x128xf32>, vector<8x128xf32> -> vector<8x128xf32>
    %4 = vector.broadcast %2 : vector<1x128xf32> to vector<8x128xf32>
    %5 = arith.addf %3, %4 : vector<8x128xf32>
    %cst_5 = arith.constant 0.000000e+00 : f32
    %6 = vector.broadcast %cst_5 : f32 to vector<8x128xf32>
    %7 = arith.cmpf ogt, %5, %6 : vector<8x128xf32>
    %cst_6 = arith.constant 1.000000e-01 : f32
    %8 = vector.broadcast %cst_6 : f32 to vector<8x128xf32>
    %9 = arith.mulf %8, %5 : vector<8x128xf32>
    %10 = arith.select %7, %5, %9 : vector<8x128xi1>, vector<8x128xf32>
    %c0_7 = arith.constant 0 : index
    %c0_8 = arith.constant 0 : index
    %11 = vector.load %arg4[%c0_7, %c0_8] : memref<128x128xf32, #tpu.memory_space<vmem>>, vector<128x128xf32>
    %c0_9 = arith.constant 0 : index
    %c0_10 = arith.constant 0 : index
    %12 = vector.load %arg5[%c0_9, %c0_10] : memref<1x128xf32, #tpu.memory_space<vmem>>, vector<1x128xf32>
    %cst_11 = arith.constant dense<0.000000e+00> : vector<8x128xf32>
    %13 = tpu.matmul %10, %11, %cst_11 {dimension_numbers = #tpu.dot_dimension_numbers<[1], [0], [0], [1], [0, 0, 1, 1], [], []>} : vector<8x128xf32>, vector<128x128xf32>, vector<8x128xf32> -> vector<8x128xf32>
    %14 = vector.broadcast %12 : vector<1x128xf32> to vector<8x128xf32>
    %15 = arith.addf %13, %14 : vector<8x128xf32>
    %cst_12 = arith.constant 0.000000e+00 : f32
    %16 = vector.broadcast %cst_12 : f32 to vector<8x128xf32>
    %17 = arith.cmpf ogt, %15, %16 : vector<8x128xf32>
    %cst_13 = arith.constant 1.000000e-01 : f32
    %18 = vector.broadcast %cst_13 : f32 to vector<8x128xf32>
    %19 = arith.mulf %18, %15 : vector<8x128xf32>
    %20 = arith.select %17, %15, %19 : vector<8x128xi1>, vector<8x128xf32>
    %c0_14 = arith.constant 0 : index
    %c0_15 = arith.constant 0 : index
    %21 = vector.load %arg6[%c0_14, %c0_15] : memref<128x128xf32, #tpu.memory_space<vmem>>, vector<128x128xf32>
    %c0_16 = arith.constant 0 : index
    %c0_17 = arith.constant 0 : index
    %22 = vector.load %arg7[%c0_16, %c0_17] : memref<1x128xf32, #tpu.memory_space<vmem>>, vector<1x128xf32>
    %cst_18 = arith.constant dense<0.000000e+00> : vector<8x128xf32>
    %23 = tpu.matmul %20, %21, %cst_18 {dimension_numbers = #tpu.dot_dimension_numbers<[1], [0], [0], [1], [0, 0, 1, 1], [], []>} : vector<8x128xf32>, vector<128x128xf32>, vector<8x128xf32> -> vector<8x128xf32>
    %24 = vector.broadcast %22 : vector<1x128xf32> to vector<8x128xf32>
    %25 = arith.addf %23, %24 : vector<8x128xf32>
    %c0_19 = arith.constant 0 : index
    %c0_20 = arith.constant 0 : index
    %26 = vector.load %arg8[%c0_19, %c0_20] : memref<8x128xf32, #tpu.memory_space<vmem>>, vector<8x128xf32>
    tpu.vector_store %arg8[%c0_19, %c0_20], %25 {strides = array<i32>} : memref<8x128xf32, #tpu.memory_space<vmem>>, vector<8x128xf32>,
    return
  }
  func.func @transform_0(%arg0: i32) -> (i32, i32) {
    %c0_i32 = arith.constant 0 : i32
    %c0_i32_0 = arith.constant 0 : i32
    return %arg0, %c0_i32 : i32, i32
  }
  func.func @transform_1(%arg0: i32) -> (i32, i32) {
    %c0_i32 = arith.constant 0 : i32
    %c0_i32_0 = arith.constant 0 : i32
    %c0_i32_1 = arith.constant 0 : i32
    return %c0_i32, %c0_i32_0 : i32, i32
  }
  func.func @transform_2(%arg0: i32) -> (i32, i32) {
    %c0_i32 = arith.constant 0 : i32
    %c0_i32_0 = arith.constant 0 : i32
    %c0_i32_1 = arith.constant 0 : i32
    return %c0_i32, %c0_i32_0 : i32, i32
  }
  func.func @transform_3(%arg0: i32) -> (i32, i32) {
    %c0_i32 = arith.constant 0 : i32
    %c0_i32_0 = arith.constant 0 : i32
    %c0_i32_1 = arith.constant 0 : i32
    return %c0_i32, %c0_i32_0 : i32, i32
  }
  func.func @transform_4(%arg0: i32) -> (i32, i32) {
    %c0_i32 = arith.constant 0 : i32
    %c0_i32_0 = arith.constant 0 : i32
    %c0_i32_1 = arith.constant 0 : i32
    return %c0_i32, %c0_i32_0 : i32, i32
  }
  func.func @transform_5(%arg0: i32) -> (i32, i32) {
    %c0_i32 = arith.constant 0 : i32
    %c0_i32_0 = arith.constant 0 : i32
    %c0_i32_1 = arith.constant 0 : i32
    return %c0_i32, %c0_i32_0 : i32, i32
  }
  func.func @transform_6(%arg0: i32) -> (i32, i32) {
    %c0_i32 = arith.constant 0 : i32
    %c0_i32_0 = arith.constant 0 : i32
    %c0_i32_1 = arith.constant 0 : i32
    return %c0_i32, %c0_i32_0 : i32, i32
  }
  func.func @transform_7(%arg0: i32) -> (i32, i32) {
    %c0_i32 = arith.constant 0 : i32
    %c0_i32_0 = arith.constant 0 : i32
    return %arg0, %c0_i32 : i32, i32
  }
}

</mosaic_0001>

<bundles_post_ra>
// kernel: tpu_custom_call.1
= control target key start
LH: loop header
LB: loop body
LE: loop exit
PB: predicated region body
PF: predicated region fallthrough
CT: control target
= control target key end

     0   :  { %12 = vsyncpa [#allocation3], 0  ;;  %s1037_s0 = inlined_call_operand.hbm [shape: f32[8,128], index: 0, kind: input, shape index: {}]   ;;  %s1038_s1 = inlined_call_operand.hbm [shape: f32[128,128], index: 1, kind: input, shape index: {}]   ;;  %s1039_s2 = inlined_call_operand.hbm [shape: f32[1,128], index: 2, kind: input, shape index: {}]   ;;  %s1040_s3 = inlined_call_operand.hbm [shape: f32[128,128], index: 3, kind: input, shape index: {}]   ;;  %s1041_s4 = inlined_call_operand.hbm [shape: f32[1,128], index: 4, kind: input, shape index: {}]   ;;  %s1042_s5 = inlined_call_operand.hbm [shape: f32[128,128], index: 5, kind: input, shape index: {}]   ;;  %s1043_s6 = inlined_call_operand.hbm [shape: f32[1,128], index: 6, kind: input, shape index: {}]   ;;  %s1044_s7 = inlined_call_operand.hbm [shape: f32[8,128], index: 7, kind: output, shape index: {}]  }
   0x1   :  { %13 = vsyncpa [#allocation6], 0 }
   0x2   :  { %14 = vsyncpa [#allocation9], 0 }
   0x3   :  { %15 = vsyncpa [#allocation12], 0 }
   0x4   :  { %16 = vsyncpa [#allocation4], 0  ;;  %s849_s24 = smov [#allocation5]   ;;  %s663_s28 = scalar_lea.hbm %s1038_s1, 2048 }
   0x5   :  { %s32_s25 = sshll.u32 %s849_s24, 4  ;;  %p664_p0 = scmp.ne.s32.totalorder %s1038_s1, %s663_s28  ;;  %s33_s25 = int_to_ptr.vmem [resolvable:$true] %s32_s25 }
   0x6   :  { %p667_p1 = scmp.lt.u32.totalorder %s663_s28, %s1038_s1 }
   0x8   :  { %p669_p2 = pnand %p667_p1, %p664_p0 }
   0xa   :  { %672 = shalt.err (!%p669_p2)
}
   0xb   :  { %s673_s10 = scalar_lea.vmem %s33_s25, 2048  ;;  %p678_p4 = scmp.lt.s32.totalorder %s33_s25, %s33_s25 }
   0xc   :  { %p674_p3 = scmp.ne.s32.totalorder %s33_s25, %s673_s10  ;;  %p679_p5 = scmp.lt.s32.totalorder %s673_s10, %s673_s10 }
   0xe   :  { %p680_p6 = por %p679_p5, %p678_p4 }
  0x10   :  { %p681_p7 = pnand %p680_p6, %p674_p3 }
  0x12   :  { %684 = shalt.err (!%p681_p7)
}
  0x13   :  { %s850_s11 = smov 128   ;;  %s851_s12 = smov 8  }
  0x14   :  { %38 = dma.hbm_to_vmem [thread:$0]  %s1038_s1, 2048, %s33_s25, [#allocation6], %s850_s11, %s850_s11, %s851_s12  }
  0x15   :  { %s852_s15 = smov [#allocation8]   ;;  %s853_s17 = smov [#allocation11]  }
  0x16   :  { %s54_s16 = sshll.u32 %s852_s15, 4  ;;  %s76_s18 = sshll.u32 %s853_s17, 4  ;;  %s55_s16 = int_to_ptr.vmem [resolvable:$true] %s54_s16  ;;  %s77_s18 = int_to_ptr.vmem [resolvable:$true] %s76_s18 }
  0x17   :  { %s685_s21 = scalar_lea.hbm %s1040_s3, 2048 }
  0x18   :  { %p686_p8 = scmp.ne.s32.totalorder %s1040_s3, %s685_s21  ;;  %p689_p9 = scmp.lt.u32.totalorder %s685_s21, %s1040_s3 }
  0x1a   :  { %p691_p10 = pnand %p689_p9, %p686_p8 }
  0x1c   :  { %694 = shalt.err (!%p691_p10)
}
  0x1d   :  { %s695_s1 = scalar_lea.vmem %s55_s16, 2048  ;;  %p700_p12 = scmp.lt.s32.totalorder %s55_s16, %s55_s16 }
  0x1e   :  { %p696_p11 = scmp.ne.s32.totalorder %s55_s16, %s695_s1  ;;  %p701_p13 = scmp.lt.s32.totalorder %s695_s1, %s695_s1 }
  0x20   :  { %p702_p0 = por %p701_p13, %p700_p12 }
  0x22   :  { %p703_p1 = pnand %p702_p0, %p696_p11 }
  0x24   :  { %706 = shalt.err (!%p703_p1)
}
  0x25   :  { %60 = dma.hbm_to_vmem [thread:$0]  %s1040_s3, 2048, %s55_s16, [#allocation9], %s850_s11, %s850_s11, %s851_s12  }
  0x26   :  { %s707_s30 = scalar_lea.hbm %s1042_s5, 2048 }
  0x27   :  { %p708_p2 = scmp.ne.s32.totalorder %s1042_s5, %s707_s30  ;;  %p711_p3 = scmp.lt.u32.totalorder %s707_s30, %s1042_s5 }
  0x29   :  { %p713_p4 = pnand %p711_p3, %p708_p2 }
  0x2b   :  { %716 = shalt.err (!%p713_p4)
}
  0x2c   :  { %s717_s14 = scalar_lea.vmem %s77_s18, 2048  ;;  %p722_p6 = scmp.lt.s32.totalorder %s77_s18, %s77_s18 }
  0x2d   :  { %p718_p5 = scmp.ne.s32.totalorder %s77_s18, %s717_s14  ;;  %p723_p7 = scmp.lt.s32.totalorder %s717_s14, %s717_s14 }
  0x2f   :  { %p724_p8 = por %p723_p7, %p722_p6 }
  0x31   :  { %p725_p9 = pnand %p724_p8, %p718_p5 }
  0x33   :  { %728 = shalt.err (!%p725_p9)
}
  0x34   :  { %82 = dma.hbm_to_vmem [thread:$0]  %s1042_s5, 2048, %s77_s18, [#allocation12], %s850_s11, %s850_s11, %s851_s12  }
  0x35   :  { %s854_s16 = smov [#allocation2]   ;;  %s855_s19 = smov [#allocation7]  }
  0x36   :  { %s23_s17 = sshll.u32 %s854_s16, 4  ;;  %s45_s20 = sshll.u32 %s855_s19, 4  ;;  %s24_s17 = int_to_ptr.vmem [resolvable:$true] %s23_s17  ;;  %s46_s20 = int_to_ptr.vmem [resolvable:$true] %s45_s20 }
  0x37   :  { %s729_s23 = scalar_lea.hbm %s1037_s0, 128 }
  0x38   :  { %p730_p10 = scmp.ne.s32.totalorder %s1037_s0, %s729_s23  ;;  %p733_p11 = scmp.lt.u32.totalorder %s729_s23, %s1037_s0 }
  0x3a   :  { %p735_p12 = pnand %p733_p11, %p730_p10 }
  0x3c   :  { %738 = shalt.err (!%p735_p12)
}
  0x3d   :  { %s739_s5 = scalar_lea.vmem %s24_s17, 128  ;;  %p744_p0 = scmp.lt.s32.totalorder %s24_s17, %s24_s17 }
  0x3e   :  { %p740_p13 = scmp.ne.s32.totalorder %s24_s17, %s739_s5  ;;  %p745_p1 = scmp.lt.s32.totalorder %s739_s5, %s739_s5 }
  0x40   :  { %p746_p2 = por %p745_p1, %p744_p0 }
  0x42   :  { %p747_p3 = pnand %p746_p2, %p740_p13 }
  0x44   :  { %750 = shalt.err (!%p747_p3)
}
  0x45   :  { %26 = dma.hbm_to_vmem [thread:$0]  %s1037_s0, 128, %s24_s17, [#allocation3]  }
  0x46   :  { %s751_s28 = scalar_lea.hbm %s1039_s2, 16 }
  0x47   :  { %p752_p4 = scmp.ne.s32.totalorder %s1039_s2, %s751_s28  ;;  %p755_p5 = scmp.lt.u32.totalorder %s751_s28, %s1039_s2 }
  0x49   :  { %p757_p6 = pnand %p755_p5, %p752_p4 }
  0x4b   :  { %760 = shalt.err (!%p757_p6)
}
  0x4c   :  { %s761_s10 = scalar_lea.vmem %s46_s20, 16  ;;  %s765_s13 = scalar_lea.vmem %s46_s20, 32 }
  0x4d   :  { %p762_p7 = scmp.ne.s32.totalorder %s46_s20, %s761_s10  ;;  %p766_p8 = scmp.lt.s32.totalorder %s46_s20, %s46_s20 }
  0x4e   :  { %p767_p9 = scmp.lt.s32.totalorder %s765_s13, %s761_s10 }
  0x50   :  { %p768_p10 = por %p767_p9, %p766_p8 }
  0x52   :  { %p769_p11 = pnand %p768_p10, %p762_p7 }
  0x54   :  { %772 = shalt.err (!%p769_p11)
}
  0x55   :  { %48 = dma.hbm_to_vmem [thread:$0]  %s1039_s2, 16, %s46_s20, [#allocation6]  }
  0x56   :  { %s856_s3 = smov [#allocation10]   ;;  %s857_s16 = smov [#allocation13]  }
  0x57   :  { %s67_s15 = sshll.u32 %s856_s3, 4  ;;  %s89_s17 = sshll.u32 %s857_s16, 4  ;;  %s68_s15 = int_to_ptr.vmem [resolvable:$true] %s67_s15  ;;  %s90_s17 = int_to_ptr.vmem [resolvable:$true] %s89_s17 }
  0x58   :  { %s773_s22 = scalar_lea.hbm %s1041_s4, 16 }
  0x59   :  { %p774_p12 = scmp.ne.s32.totalorder %s1041_s4, %s773_s22  ;;  %p777_p13 = scmp.lt.u32.totalorder %s773_s22, %s1041_s4 }
  0x5b   :  { %p779_p0 = pnand %p777_p13, %p774_p12 }
  0x5d   :  { %782 = shalt.err (!%p779_p0)
}
  0x5e   :  { %s783_s2 = scalar_lea.vmem %s68_s15, 16  ;;  %s787_s20 = scalar_lea.vmem %s68_s15, 32 }
  0x5f   :  { %p784_p1 = scmp.ne.s32.totalorder %s68_s15, %s783_s2  ;;  %p788_p2 = scmp.lt.s32.totalorder %s68_s15, %s68_s15 }
  0x60   :  { %p789_p3 = scmp.lt.s32.totalorder %s787_s20, %s783_s2 }
  0x62   :  { %p790_p4 = por %p789_p3, %p788_p2 }
  0x64   :  { %p791_p5 = pnand %p790_p4, %p784_p1 }
  0x66   :  { %794 = shalt.err (!%p791_p5)
}
  0x67   :  { %70 = dma.hbm_to_vmem [thread:$0]  %s1041_s4, 16, %s68_s15, [#allocation9]  }
  0x68   :  { %s795_s18 = scalar_lea.hbm %s1043_s6, 16 }
  0x69   :  { %p796_p6 = scmp.ne.s32.totalorder %s1043_s6, %s795_s18  ;;  %p799_p7 = scmp.lt.u32.totalorder %s795_s18, %s1043_s6 }
  0x6b   :  { %p801_p8 = pnand %p799_p7, %p796_p6 }
  0x6d   :  { %804 = shalt.err (!%p801_p8)
}
  0x6e   :  { %s805_s8 = scalar_lea.vmem %s90_s17, 16  ;;  %s809_s9 = scalar_lea.vmem %s90_s17, 32 }
  0x6f   :  { %p806_p9 = scmp.ne.s32.totalorder %s90_s17, %s805_s8  ;;  %p810_p10 = scmp.lt.s32.totalorder %s90_s17, %s90_s17 }
  0x70   :  { %p811_p11 = scmp.lt.s32.totalorder %s809_s9, %s805_s8 }
  0x72   :  { %p812_p12 = por %p811_p11, %p810_p10 }
  0x74   :  { %p813_p13 = pnand %p812_p12, %p806_p9 }
  0x76   :  { %816 = shalt.err (!%p813_p13)
}
  0x77   :  { %92 = dma.hbm_to_vmem [thread:$0]  %s1043_s6, 16, %s90_s17, [#allocation12]  }
  0x78   :  { %839 = dma.done.wait [#allocation3], 128  }
  0x79   :  { %840 = vsyncadd [#allocation3], 4294967168 }
  0x7a   :  { %841 = dma.done.wait [#allocation6], 2064  }
  0x7b   :  { %842 = vsyncadd [#allocation6], 4294965232 }
  0x7c   :  { %843 = dma.done.wait [#allocation9], 2064  }
  0x7d   :  { %844 = vsyncadd [#allocation9], 4294965232 }
  0x7e   :  { %845 = dma.done.wait [#allocation12], 2064  }
  0x7f   :  { %846 = vsyncadd [#allocation12], 4294965232  ;;  %v858_v0 = vmov 0.0|0.0   ;;  %vm859_vm0 = vmmov 0   ;;  %v860_v1 = vmov 0.0   ;;  %v115_v2 = vld [vmem:[#allocation5] sm:$0xff] }
  0x80   :  { %578 = vmatprep.subr.bf16.mxu0 %v858_v0  ;;  %505 = vmatprep.mubr.msk.f32.mxu0 %vm859_vm0, %v860_v1  ;;  %v116_v3 = vld [vmem:[#allocation5 + $0x8] sm:$0xff]  ;;  %v117_v4 = vld [vmem:[#allocation5 + $0x10] sm:$0xff]  ;;  %v118_v6 = vld [vmem:[#allocation5 + $0x18] sm:$0xff]  ;;  %s861_s6 = smov [#allocation14]  }
  0x81   :  { %602 = vmatprep.subr.bf16.mxu1 %v858_v0  ;;  %540 = vmatprep.mubr.msk.f32.mxu1 %vm859_vm0, %v860_v1  ;;  %v579_v5 = vpack.c.bf16 %v116_v3, %v115_v2  ;;  %v582_v7 = vpack.c.bf16 %v118_v6, %v117_v4  ;;  %v119_v8 = vld [vmem:[#allocation5 + $0x20] sm:$0xff]  ;;  %v120_v9 = vld [vmem:[#allocation5 + $0x28] sm:$0xff]  ;;  %v213_v12 = vld [vmem:[#allocation8 + $0x10] sm:$0xff]  ;;  %s407_s13 = sshll.u32 %s861_s6, 4  ;;  %s408_s13 = int_to_ptr.vmem [resolvable:$true] %s407_s13 }
  0x82   :  { %v211_v10 = vld [vmem:[#allocation8] sm:$0xff]  ;;  %v212_v11 = vld [vmem:[#allocation8 + $0x8] sm:$0xff]  ;;  %v214_v13 = vld [vmem:[#allocation8 + $0x18] sm:$0xff]  ;;  %v585_v14 = vpack.c.bf16 %v120_v9, %v119_v8  ;;  %s817_s0 = scalar_lea.vmem %s408_s13, 128  ;;  %p822_p1 = scmp.lt.s32.totalorder %s408_s13, %s408_s13 }
  0x83   :  { %580 = vmatpush3.bf16.msra.mxu0 %v579_v5  ;;  %v603_v15 = vpack.c.bf16 %v212_v11, %v211_v10  ;;  %v121_v16 = vld [vmem:[#allocation5 + $0x30] sm:$0xff]  ;;  %v122_v17 = vld [vmem:[#allocation5 + $0x38] sm:$0xff]  ;;  %v606_v18 = vpack.c.bf16 %v214_v13, %v213_v12  ;;  %v215_v19 = vld [vmem:[#allocation8 + $0x20] sm:$0xff]  ;;  %p818_p0 = scmp.ne.s32.totalorder %s408_s13, %s817_s0  ;;  %p823_p2 = scmp.lt.s32.totalorder %s817_s0, %s817_s0 }
  0x84   :  { %581 = vmatprep.subr.bf16.mxu0 %v858_v0  ;;  %v216_v20 = vld [vmem:[#allocation8 + $0x28] sm:$0xff]  ;;  %v588_v21 = vpack.c.bf16 %v122_v17, %v121_v16  ;;  %v123_v22 = vld [vmem:[#allocation5 + $0x40] sm:$0xff]  ;;  %v217_v25 = vld [vmem:[#allocation8 + $0x30] sm:$0xff] }
  0x85   :  { %604 = vmatpush3.bf16.msra.mxu1 %v603_v15  ;;  %v124_v23 = vld [vmem:[#allocation5 + $0x48] sm:$0xff]  ;;  %v609_v24 = vpack.c.bf16 %v216_v20, %v215_v19  ;;  %v218_v26 = vld [vmem:[#allocation8 + $0x38] sm:$0xff]  ;;  %v125_v28 = vld [vmem:[#allocation5 + $0x50] sm:$0xff]  ;;  %p824_p3 = por %p823_p2, %p822_p1 }
  0x86   :  { %605 = vmatprep.subr.bf16.mxu1 %v858_v0  ;;  %v591_v27 = vpack.c.bf16 %v124_v23, %v123_v22  ;;  %v126_v29 = vld [vmem:[#allocation5 + $0x58] sm:$0xff]  ;;  %v612_v30 = vpack.c.bf16 %v218_v26, %v217_v25  ;;  %v219_v31 = vld [vmem:[#allocation8 + $0x40] sm:$0xff]  ;;  %v220_v32 = vld [vmem:[#allocation8 + $0x48] sm:$0xff] }
  0x87   :  { %583 = vmatpush3.bf16.msra.mxu0 %v582_v7  ;;  %v594_v33 = vpack.c.bf16 %v126_v29, %v125_v28  ;;  %v127_v34 = vld [vmem:[#allocation5 + $0x60] sm:$0xff]  ;;  %v128_v35 = vld [vmem:[#allocation5 + $0x68] sm:$0xff]  ;;  %v615_v36 = vpack.c.bf16 %v220_v32, %v219_v31  ;;  %v221_v37 = vld [vmem:[#allocation8 + $0x50] sm:$0xff]  ;;  %p825_p4 = pnand %p824_p3, %p818_p0 }
  0x88   :  { %584 = vmatprep.subr.bf16.mxu0 %v858_v0  ;;  %v222_v38 = vld [vmem:[#allocation8 + $0x58] sm:$0xff]  ;;  %v597_v39 = vpack.c.bf16 %v128_v35, %v127_v34  ;;  %v129_v40 = vld [vmem:[#allocation5 + $0x70] sm:$0xff]  ;;  %v223_v43 = vld [vmem:[#allocation8 + $0x60] sm:$0xff] }
  0x89   :  { %607 = vmatpush3.bf16.msra.mxu1 %v606_v18  ;;  %v130_v41 = vld [vmem:[#allocation5 + $0x78] sm:$0xff]  ;;  %v618_v42 = vpack.c.bf16 %v222_v38, %v221_v37  ;;  %v224_v44 = vld [vmem:[#allocation8 + $0x68] sm:$0xff]  ;;  %v419_v9 = vld [vmem:[#allocation7] ss:$0 sm:$0xff] }
  0x8a   :  { %608 = vmatprep.subr.bf16.mxu1 %v858_v0  ;;  %v600_v45 = vpack.c.bf16 %v130_v41, %v129_v40  ;;  %v621_v46 = vpack.c.bf16 %v224_v44, %v223_v43  ;;  %v114_v47 = vld [vmem:[#allocation2] sm:$0xff]  ;;  %v307_v51 = vld [vmem:[#allocation11] sm:$0xff]  ;;  %v308_v52 = vld [vmem:[#allocation11 + $0x8] sm:$0xff] }
  0x8b   :  { %586 = vmatpush3.bf16.msra.mxu0 %v585_v14  ;;  %v225_v48 = vld [vmem:[#allocation8 + $0x70] sm:$0xff]  ;;  %v226_v49 = vld [vmem:[#allocation8 + $0x78] sm:$0xff]  ;;  %v627_v54 = vpack.c.bf16 %v308_v52, %v307_v51  ;;  %v311_v57 = vld [vmem:[#allocation11 + $0x20] sm:$0xff] }
  0x8c   :  { %587 = vmatprep.subr.bf16.mxu0 %v858_v0  ;;  %v624_v50 = vpack.c.bf16 %v226_v49, %v225_v48  ;;  %v309_v53 = vld [vmem:[#allocation11 + $0x10] sm:$0xff]  ;;  %v310_v55 = vld [vmem:[#allocation11 + $0x18] sm:$0xff]  ;;  %v312_v58 = vld [vmem:[#allocation11 + $0x28] sm:$0xff] }
  0x8d   :  { %610 = vmatpush3.bf16.msra.mxu1 %v609_v24  ;;  %v630_v56 = vpack.c.bf16 %v310_v55, %v309_v53  ;;  %v633_v59 = vpack.c.bf16 %v312_v58, %v311_v57  ;;  %v313_v60 = vld [vmem:[#allocation11 + $0x30] sm:$0xff]  ;;  %v314_v61 = vld [vmem:[#allocation11 + $0x38] sm:$0xff]  ;;  %v315_v63 = vld [vmem:[#allocation11 + $0x40] sm:$0xff] }
  0x8e   :  { %611 = vmatprep.subr.bf16.mxu1 %v858_v0  ;;  %v636_v62 = vpack.c.bf16 %v314_v61, %v313_v60  ;;  %v317_v3 = vld [vmem:[#allocation11 + $0x50] sm:$0xff]  ;;  %v318_v4 = vld [vmem:[#allocation11 + $0x58] sm:$0xff]  ;;  %v319_v6 = vld [vmem:[#allocation11 + $0x60] sm:$0xff] }
  0x8f   :  { %589 = vmatpush3.bf16.msra.mxu0 %v588_v21  ;;  %v642_v5 = vpack.c.bf16 %v318_v4, %v317_v3  ;;  %v320_v7 = vld [vmem:[#allocation11 + $0x68] sm:$0xff]  ;;  %v321_v15 = vld [vmem:[#allocation11 + $0x70] sm:$0xff]  ;;  %v322_v16 = vld [vmem:[#allocation11 + $0x78] sm:$0xff] }
  0x90   :  { %590 = vmatprep.subr.bf16.mxu0 %v858_v0  ;;  %v645_v8 = vpack.c.bf16 %v320_v7, %v319_v6  ;;  %v648_v17 = vpack.c.bf16 %v322_v16, %v321_v15  ;;  %v420_v18 = vld [vmem:[#allocation10] ss:$0 sm:$0xff] }
  0x91   :  { %613 = vmatpush3.bf16.msra.mxu1 %v612_v30 }
  0x92   :  { %614 = vmatprep.subr.bf16.mxu1 %v858_v0 }
  0x93   :  { %592 = vmatpush3.bf16.msra.mxu0 %v591_v27 }
  0x94   :  { %593 = vmatprep.subr.bf16.mxu0 %v858_v0 }
  0x95   :  { %616 = vmatpush3.bf16.msra.mxu1 %v615_v36 }
  0x96   :  { %617 = vmatprep.subr.bf16.mxu1 %v858_v0 }
  0x97   :  { %595 = vmatpush3.bf16.msra.mxu0 %v594_v33 }
  0x98   :  { %596 = vmatprep.subr.bf16.mxu0 %v858_v0 }
  0x99   :  { %619 = vmatpush3.bf16.msra.mxu1 %v618_v42 }
  0x9a   :  { %620 = vmatprep.subr.bf16.mxu1 %v858_v0 }
  0x9b   :  { %598 = vmatpush3.bf16.msra.mxu0 %v597_v39 }
  0x9c   :  { %599 = vmatprep.subr.bf16.mxu0 %v858_v0 }
  0x9d   :  { %622 = vmatpush3.bf16.msra.mxu1 %v621_v46 }
  0x9e   :  { %623 = vmatprep.subr.bf16.mxu1 %v858_v0 }
  0x9f   :  { %601 = vmatpush3.bf16.msra.mxu0 %v600_v45 }
  0xa0   :  { %626 = vmatprep.subr.bf16.mxu0 %v858_v0 }
  0xa1   :  { %625 = vmatpush3.bf16.msra.mxu1 %v624_v50 }
  0xa2   :  { %506 = vmatmul.mubr.f32.vlgmr.msra.gmra.mrb[0].mxu0 %v114_v47 }
  0xa3   :  { %575 = vmatprep.mubr.msk.f32.mxu0 %vm859_vm0, %v860_v1  ;;  %628 = vmatpush3.bf16.msra.mxu0 %v627_v54  ;;  %v316_v1 = vld [vmem:[#allocation11 + $0x48] sm:$0xff] }
  0xa4   :  { %629 = vmatprep.subr.bf16.mxu0 %v858_v0  ;;  %v639_v2 = vpack.c.bf16 %v316_v1, %v315_v63 }
  0xa7   :  { %631 = vmatpush3.bf16.msra.mxu0 %v630_v56 }
  0xa8   :  { %632 = vmatprep.subr.bf16.mxu0 %v858_v0 }
  0xab   :  { %634 = vmatpush3.bf16.msra.mxu0 %v633_v59 }
  0xac   :  { %635 = vmatprep.subr.bf16.mxu0 %v858_v0 }
  0xaf   :  { %637 = vmatpush3.bf16.msra.mxu0 %v636_v62 }
  0xb0   :  { %638 = vmatprep.subr.bf16.mxu0 %v858_v0 }
  0xb3   :  { %640 = vmatpush3.bf16.msra.mxu0 %v639_v2 }
  0xb4   :  { %641 = vmatprep.subr.bf16.mxu0 %v858_v0 }
  0xb7   :  { %643 = vmatpush3.bf16.msra.mxu0 %v642_v5 }
  0xb8   :  { %644 = vmatprep.subr.bf16.mxu0 %v858_v0 }
  0xbb   :  { %646 = vmatpush3.bf16.msra.mxu0 %v645_v8 }
  0xbc   :  { %647 = vmatprep.subr.bf16.mxu0 %v858_v0  ;;  %v421_v0 = vld [vmem:[#allocation13] ss:$0 sm:$0xff] }
  0xbf   :  { %649 = vmatpush3.bf16.msra.mxu0 %v648_v17 }
 0x175   :  { %v204_v10 = vpop.f32.mrb[0].mxu0 }
 0x176   :  { %v205_v11 = vadd.f32 %v419_v9, %v204_v10  ;;  %v507_v12 = vpop.f32.mrb[1].mxu0 }
 0x178   :  { %v209_v13 = vmul.f32 0.1, %v205_v11  ;;  %vm208_vm1 = vcmp.gt.f32.partialorder %v205_v11, 0.0 }
 0x17a   :  { %v210_v14 = vsel %vm208_vm1, %v205_v11, %v209_v13 }
 0x17b   :  { %541 = vmatmul.mubr.f32.vlgmr.msra.gmra.mrb[0].mxu1 %v210_v14 }
 0x24e   :  { %v300_v19 = vpop.f32.mrb[0].mxu1 }
 0x24f   :  { %v301_v20 = vadd.f32 %v420_v18, %v300_v19  ;;  %v542_v21 = vpop.f32.mrb[1].mxu1 }
 0x251   :  { %vm304_vm2 = vcmp.gt.f32.partialorder %v301_v20, 0.0  ;;  %v305_v22 = vmul.f32 0.1, %v301_v20 }
 0x253   :  { %v306_v23 = vsel %vm304_vm2, %v301_v20, %v305_v22 }
 0x254   :  { %576 = vmatmul.mubr.f32.vlgmr.msra.gmra.mrb[2].mxu0 %v306_v23 }
 0x327   :  { %v396_v24 = vpop.f32.mrb[2].mxu0 }
 0x328   :  { %v397_v25 = vadd.f32 %v421_v0, %v396_v24  ;;  %v577_v26 = vpop.f32.mrb[3].mxu0 }
 0x32a   :  { %400 = vst [vmem:[#allocation14] sm:$0xff] %v397_v25 }
 0x32b   :  { %828 = shalt.err (!%p825_p4)
}
 0x32c   :  { %s829_s15 = scalar_lea.hbm %s1044_s7, 128 }
 0x32d   :  { %p830_p5 = scmp.ne.s32.totalorder %s1044_s7, %s829_s15  ;;  %p833_p6 = scmp.lt.u32.totalorder %s829_s15, %s1044_s7 }
 0x32f   :  { %p835_p7 = pnand %p833_p6, %p830_p5 }
 0x331   :  { %838 = shalt.err (!%p835_p7)
}
 0x332   :  { %410 = dma.vmem_to_hbm [thread:$0]  %s408_s13, 128, %s1044_s7, [#allocation4]  }
 0x333   :  { %847 = dma.done.wait [#allocation4], 128  }
 0x334   :  { %848 = vsyncadd [#allocation4], 4294967168 }
 0x335   :  { %414 = vsyncpa [#allocation3], 1 }
 0x336   :  { %415 = vsyncpa [#allocation6], 1 }
 0x337   :  { %416 = vsyncpa [#allocation9], 1 }
 0x338   :  { %417 = vsyncpa [#allocation12], 1 }
 0x339   :  { %418 = vsyncpa [#allocation4], 1 }

</bundles_post_ra>
